<compile_context>
chip_gen: v7x
topology: tpu7x:2x2x1
jax: 0.10.0
libtpu: 0.0.40
codegen_flags: <defaults>
</compile_context>

<pallas_src>
import numpy as np

import jax
import jax.numpy as jnp
from jax.experimental import pallas as pl
from jax.experimental.pallas import tpu as pltpu


# ----------------------------------------------------------------------------
# align_corners=True bilinear interpolation matrix (n_out, n_in), float64.
# ----------------------------------------------------------------------------
def _interp_matrix_np(n_out: int, n_in: int) -> np.ndarray:
    if n_out == 1 or n_in == 1:
        src = np.zeros((n_out,), dtype=np.float64)
    else:
        src = np.arange(n_out, dtype=np.float64) * ((n_in - 1) / (n_out - 1))
    lo = np.minimum(np.floor(src).astype(np.int64), n_in - 1)
    hi = np.minimum(lo + 1, n_in - 1)
    frac = src - lo
    a = np.zeros((n_out, n_in), dtype=np.float64)
    rows = np.arange(n_out)
    a[rows, lo] += 1.0 - frac
    a[rows, hi] += frac
    return a


# ----------------------------------------------------------------------------
# Static plan: per-feature resize chain replicating the reference's chained
# resizes (each "out" upsample applies to everything accumulated so far).
# ----------------------------------------------------------------------------
def _build_plan(shapes):
    """shapes: list of (C, H, W).  Returns (chains, hf, wf)."""
    cur_h, cur_w = shapes[0][1], shapes[0][2]
    chains = [[] for _ in shapes]
    for i in range(1, len(shapes)):
        _, h, w = shapes[i]
        if cur_h > h:                    # upsample the newly collected tensor
            chains[i].append((h, w, cur_h, cur_w))
        elif h > cur_h:                  # upsample everything accumulated
            for j in range(i):
                chains[j].append((cur_h, cur_w, h, w))
            cur_h, cur_w = h, w
    return chains, cur_h, cur_w


def _composed_mats(chain, wf, wf_pad):
    """Compose a chain of resizes into one (A_h, A_w^T-padded) f32 pair."""
    ah = None
    aw = None
    for (sh, sw, dh, dw) in chain:
        step_h = _interp_matrix_np(dh, sh)
        step_w = _interp_matrix_np(dw, sw)
        ah = step_h if ah is None else step_h @ ah
        aw = step_w if aw is None else step_w @ aw
    assert aw.shape[0] == wf
    awt = np.zeros((aw.shape[1], wf_pad), dtype=np.float64)
    awt[:, :wf] = aw.T                   # zero lane-padding columns
    return (jnp.asarray(ah, dtype=jnp.float32),
            jnp.asarray(awt, dtype=jnp.float32))


# ----------------------------------------------------------------------------
# Fused kernel (generated per static plan).
# ----------------------------------------------------------------------------
def _make_fused_kernel(plan, n_mats, agg_concat, wf_pad):
    """plan: list of (C, src_H, resized) per collected feature."""
    n_feat = len(plan)

    def kernel(*refs):
        feat_refs = refs[:n_feat]
        mat_refs = refs[n_feat:n_feat + n_mats]
        o_ref = refs[n_feat + n_mats]

        acc = None
        m = 0
        off = 0
        for i, (c, h_src, resized) in enumerate(plan):
            v = feat_refs[i][...]
            if resized:
                ah = mat_refs[m][...]          # (hf, h_src)
                awt = mat_refs[m + 1][...]     # (w_src, wf_pad)
                m += 2
                # Separable bilinear resize as two channel-folded MXU matmuls:
                # W pass on the (h*c, w) layout, then H pass on (h, c*wf_pad).
                t = jnp.dot(v, awt, preferred_element_type=jnp.float32)
                t = t.reshape(h_src, c * wf_pad)   # 128-aligned lane regroup
                blk = jnp.dot(ah, t, preferred_element_type=jnp.float32)
            else:
                blk = v                            # already (hf, c*wf_pad)
            if agg_concat:
                # Channel concat == disjoint lane slices of the output block;
                # ReLU fused into the store -> no growing accumulator copies.
                o_ref[:, off:off + c * wf_pad] = jnp.maximum(blk, 0.0)
                off += c * wf_pad
            else:
                acc = blk if acc is None else acc + blk
        if not agg_concat:
            o_ref[...] = jnp.maximum(acc, 0.0)

    return kernel


# ----------------------------------------------------------------------------
# Wrapper
# ----------------------------------------------------------------------------
def _round_up(x, m):
    return (x + m - 1) // m * m


def _vmem_limit_bytes():
    try:
        cap = int(pltpu.get_tpu_info().vmem_capacity_bytes)
        # ~48 MiB on v7x (64 MiB/TC), ~96 MiB on v5e/v6e (128 MiB/TC).
        return max(32 * 1024 * 1024, min(cap * 3 // 4, 112 * 1024 * 1024))
    except Exception:
        return 48 * 1024 * 1024


def micro_decoder_upsample(x_list, collect_inds, agg_concat):
    """Pallas implementation of MicroDecoder_Upsample.forward (NCHW, f32)."""
    feats_nchw = [x_list[i] for i in collect_inds]
    n = int(feats_nchw[0].shape[0])
    shapes = [(int(f.shape[1]), int(f.shape[2]), int(f.shape[3]))
              for f in feats_nchw]
    chains, hf, wf = _build_plan(shapes)

    if agg_concat:
        cf = sum(c for c, _, _ in shapes)
    else:
        assert all(c == shapes[0][0] for c, _, _ in shapes), \
            "elementwise add requires equal channel counts"
        cf = shapes[0][0]

    wf_pad = _round_up(wf, 128)   # lane-dense output / aligned lane slices

    feats, mats, plan = [], [], []
    flops = 0
    for f, (c, h, w), chain in zip(feats_nchw, shapes, chains):
        # TODO(synk): fold this transpose into the producer / BlockSpec when
        # the surrounding graph can supply (N, H, C, W) directly.
        nhcw = jnp.transpose(f, (0, 2, 1, 3))            # (n, h, c, w)
        if chain:
            feats.append(nhcw.reshape(n, h * c, w))      # W-pass-ready layout
            ah, awt = _composed_mats(chain, wf, wf_pad)
            mats += [ah, awt]
            plan.append((c, h, True))
            flops += 2 * (h * c) * w * wf_pad + 2 * hf * h * c * wf_pad
        else:
            assert h == hf and w == wf, "un-resized feature must match output"
            if wf_pad != wf:
                nhcw = jnp.pad(nhcw,
                               ((0, 0), (0, 0), (0, 0), (0, wf_pad - wf)))
            feats.append(nhcw.reshape(n, h, c * wf_pad))
            plan.append((c, h, False))
    flops *= n

    kernel = _make_fused_kernel(plan, len(mats), agg_concat, wf_pad)

    in_specs = [
        pl.BlockSpec((pl.Squeezed(),) + tuple(f.shape[1:]),
                     lambda b: (b, 0, 0))
        for f in feats
    ]
    in_specs += [pl.BlockSpec(m.shape, lambda b: (0, 0)) for m in mats]
    out_spec = pl.BlockSpec((pl.Squeezed(), hf, cf * wf_pad),
                            lambda b: (b, 0, 0))

    bytes_accessed = 4 * (sum(int(f.size) for f in feats)
                          + sum(int(m.size) for m in mats)
                          + n * hf * cf * wf_pad)

    out_flat = pl.pallas_call(
        kernel,
        out_shape=jax.ShapeDtypeStruct((n, hf, cf * wf_pad), jnp.float32),
        grid=(n,),
        in_specs=in_specs,
        out_specs=out_spec,
        compiler_params=pltpu.CompilerParams(
            dimension_semantics=("parallel",),
            vmem_limit_bytes=_vmem_limit_bytes(),
        ),
        cost_estimate=pl.CostEstimate(
            flops=flops, transcendentals=0, bytes_accessed=bytes_accessed),
    )(*feats, *mats)

    # Crop the lane padding and restore the module's NCHW output convention.
    out = out_flat.reshape(n, hf, cf, wf_pad)[:, :, :, :wf]
    return jnp.transpose(out, (0, 2, 1, 3))


# ----------------------------------------------------------------------------
# Pure-JAX reference (gather-based bilinear, align_corners=True, chained)
# ----------------------------------------------------------------------------
def _ref_bilinear(x, out_h, out_w):
    n, c, h, w = x.shape
    def coord(o, inn):
        if o == 1 or inn == 1:
            return jnp.zeros((o,), dtype=jnp.float32)
        return jnp.arange(o, dtype=jnp.float32) * ((inn - 1) / (o - 1))
    sy, sx = coord(out_h, h), coord(out_w, w)
    y0 = jnp.floor(sy).astype(jnp.int32); y1 = jnp.minimum(y0 + 1, h - 1)
    x0 = jnp.floor(sx).astype(jnp.int32); x1 = jnp.minimum(x0 + 1, w - 1)
    fy = (sy - y0)[None, None, :, None]
    fx = (sx - x0)[None, None, None, :]
    top = x[:, :, y0, :][:, :, :, x0] * (1 - fx) + x[:, :, y0, :][:, :, :, x1] * fx
    bot = x[:, :, y1, :][:, :, :, x0] * (1 - fx) + x[:, :, y1, :][:, :, :, x1] * fx
    return top * (1 - fy) + bot * fy


def _ref_forward(x_list, collect_inds, agg_concat):
    out = x_list[collect_inds[0]]
    for i in range(1, len(collect_inds)):
        collect = x_list[collect_inds[i]]
        if out.shape[2] > collect.shape[2]:
            collect = _ref_bilinear(collect, out.shape[2], out.shape[3])
        elif collect.shape[2] > out.shape[2]:
            out = _ref_bilinear(out, collect.shape[2], collect.shape[3])
        if agg_concat:
            out = jnp.concatenate([out, collect], axis=1)
        else:
            out = out + collect
    return jnp.maximum(out, 0.0)


# ----------------------------------------------------------------------------
# Main
# ----------------------------------------------------------------------------
if __name__ == "__main__":
    key = jax.random.PRNGKey(0)
    k0, k1, k2, k3 = jax.random.split(key, 4)
    # Multi-scale feature maps produced by an upstream micro-decoder cell.
    x0 = jax.random.normal(k0, (2, 4, 16, 16), dtype=jnp.float32)
    x1 = jax.random.normal(k1, (2, 4, 8, 8), dtype=jnp.float32)
    x2 = jax.random.normal(k2, (2, 4, 16, 16), dtype=jnp.float32)
    x3 = jax.random.normal(k3, (2, 4, 32, 32), dtype=jnp.float32)
    x_list = [x0, x1, x2, x3]

    ok = True
    cases = ([0, 1, 2], [1, 0, 2], [0], [0, 1, 2, 3], [1, 0, 3])
    for collect_inds in cases:
        for agg_concat in (True, False):
            out = jax.block_until_ready(
                micro_decoder_upsample(x_list, collect_inds, agg_concat))
            ref = jax.block_until_ready(
                _ref_forward(x_list, collect_inds, agg_concat))
            if out.shape != ref.shape or not jnp.allclose(
                    out, ref, atol=1e-5, rtol=1e-5):
                ok = False
                print("MISMATCH collect_inds=", collect_inds,
                      "agg_concat=", agg_concat,
                      float(jnp.max(jnp.abs(out - ref))))

    if ok:
        print("KERNEL_OK")
</pallas_src>

<mosaic_0001>
module attributes {stable_mosaic.version = 11 : i64} {
  func.func @kernel(%arg0: i32, %arg1: memref<1x16x512xf32, #tpu.memory_space<vmem>>, %arg2: memref<1x32x8xf32, #tpu.memory_space<vmem>>, %arg3: memref<1x16x512xf32, #tpu.memory_space<vmem>>, %arg4: memref<16x8xf32, #tpu.memory_space<vmem>>, %arg5: memref<8x128xf32, #tpu.memory_space<vmem>>, %arg6: memref<1x16x1536xf32, #tpu.memory_space<vmem>>) attributes {dimension_semantics = [#tpu.dimension_semantics<parallel>], iteration_bounds = array<i64: 2>, scalar_prefetch = 0 : i64, scratch_operands = 0 : i64, tpu.core_type = #tpu.core_type<tc>, window_params = [{transform_indices = @transform_0, window_bounds = array<i64: 1, 16, 512>}, {transform_indices = @transform_1, window_bounds = array<i64: 1, 32, 8>}, {transform_indices = @transform_2, window_bounds = array<i64: 1, 16, 512>}, {pipeline_mode = #tpu.pipeline_mode<synchronous>, transform_indices = @transform_3, window_bounds = array<i64: 16, 8>}, {pipeline_mode = #tpu.pipeline_mode<synchronous>, transform_indices = @transform_4, window_bounds = array<i64: 8, 128>}, {transform_indices = @transform_5, window_bounds = array<i64: 1, 16, 1536>}]} {
    %c0 = arith.constant 0 : index
    %c0_0 = arith.constant 0 : index
    %c0_1 = arith.constant 0 : index
    %0 = vector.load %arg1[%c0, %c0_0, %c0_1] : memref<1x16x512xf32, #tpu.memory_space<vmem>>, vector<1x16x512xf32>
    %1 = vector.shape_cast %0 : vector<1x16x512xf32> to vector<16x512xf32>
    %cst = arith.constant 0.000000e+00 : f32
    %2 = vector.broadcast %cst : f32 to vector<16x512xf32>
    %3 = arith.maximumf %1, %2 : vector<16x512xf32>
    %c0_2 = arith.constant 0 : index
    %c0_3 = arith.constant 0 : index
    %c0_4 = arith.constant 0 : index
    %4 = vector.load %arg6[%c0_2, %c0_3, %c0_4] : memref<1x16x1536xf32, #tpu.memory_space<vmem>>, vector<1x16x512xf32>
    %5 = vector.shape_cast %4 : vector<1x16x512xf32> to vector<16x512xf32>
    %6 = vector.shape_cast %3 : vector<16x512xf32> to vector<1x16x512xf32>
    tpu.vector_store %arg6[%c0_2, %c0_3, %c0_4], %6 {strides = array<i32>} : memref<1x16x1536xf32, #tpu.memory_space<vmem>>, vector<1x16x512xf32>,
    %c0_5 = arith.constant 0 : index
    %c0_6 = arith.constant 0 : index
    %c0_7 = arith.constant 0 : index
    %7 = vector.load %arg2[%c0_5, %c0_6, %c0_7] : memref<1x32x8xf32, #tpu.memory_space<vmem>>, vector<1x32x8xf32>
    %8 = vector.shape_cast %7 : vector<1x32x8xf32> to vector<32x8xf32>
    %c0_8 = arith.constant 0 : index
    %c0_9 = arith.constant 0 : index
    %9 = vector.load %arg4[%c0_8, %c0_9] : memref<16x8xf32, #tpu.memory_space<vmem>>, vector<16x8xf32>
    %c0_10 = arith.constant 0 : index
    %c0_11 = arith.constant 0 : index
    %10 = vector.load %arg5[%c0_10, %c0_11] : memref<8x128xf32, #tpu.memory_space<vmem>>, vector<8x128xf32>
    %cst_12 = arith.constant dense<0.000000e+00> : vector<32x128xf32>
    %11 = tpu.matmul %8, %10, %cst_12 {dimension_numbers = #tpu.dot_dimension_numbers<[1], [0], [0], [1], [0, 0, 1, 1], [], []>} : vector<32x8xf32>, vector<8x128xf32>, vector<32x128xf32> -> vector<32x128xf32>
    %12 = vector.shape_cast %11 : vector<32x128xf32> to vector<8x512xf32>
    %cst_13 = arith.constant dense<0.000000e+00> : vector<16x512xf32>
    %13 = tpu.matmul %9, %12, %cst_13 {dimension_numbers = #tpu.dot_dimension_numbers<[1], [0], [0], [1], [0, 0, 1, 1], [], []>} : vector<16x8xf32>, vector<8x512xf32>, vector<16x512xf32> -> vector<16x512xf32>
    %cst_14 = arith.constant 0.000000e+00 : f32
    %14 = vector.broadcast %cst_14 : f32 to vector<16x512xf32>
    %15 = arith.maximumf %13, %14 : vector<16x512xf32>
    %c0_15 = arith.constant 0 : index
    %c0_16 = arith.constant 0 : index
    %c512 = arith.constant 512 : index
    %16 = vector.load %arg6[%c0_15, %c0_16, %c512] : memref<1x16x1536xf32, #tpu.memory_space<vmem>>, vector<1x16x512xf32>
    %17 = vector.shape_cast %16 : vector<1x16x512xf32> to vector<16x512xf32>
    %18 = vector.shape_cast %15 : vector<16x512xf32> to vector<1x16x512xf32>
    tpu.vector_store %arg6[%c0_15, %c0_16, %c512], %18 {strides = array<i32>} : memref<1x16x1536xf32, #tpu.memory_space<vmem>>, vector<1x16x512xf32>,
    %c0_17 = arith.constant 0 : index
    %c0_18 = arith.constant 0 : index
    %c0_19 = arith.constant 0 : index
    %19 = vector.load %arg3[%c0_17, %c0_18, %c0_19] : memref<1x16x512xf32, #tpu.memory_space<vmem>>, vector<1x16x512xf32>
    %20 = vector.shape_cast %19 : vector<1x16x512xf32> to vector<16x512xf32>
    %cst_20 = arith.constant 0.000000e+00 : f32
    %21 = vector.broadcast %cst_20 : f32 to vector<16x512xf32>
    %22 = arith.maximumf %20, %21 : vector<16x512xf32>
    %c0_21 = arith.constant 0 : index
    %c0_22 = arith.constant 0 : index
    %c1024 = arith.constant 1024 : index
    %23 = vector.load %arg6[%c0_21, %c0_22, %c1024] : memref<1x16x1536xf32, #tpu.memory_space<vmem>>, vector<1x16x512xf32>
    %24 = vector.shape_cast %23 : vector<1x16x512xf32> to vector<16x512xf32>
    %25 = vector.shape_cast %22 : vector<16x512xf32> to vector<1x16x512xf32>
    tpu.vector_store %arg6[%c0_21, %c0_22, %c1024], %25 {strides = array<i32>} : memref<1x16x1536xf32, #tpu.memory_space<vmem>>, vector<1x16x512xf32>,
    return
  }
  func.func @transform_0(%arg0: i32) -> (i32, i32, i32) {
    %c0_i32 = arith.constant 0 : i32
    %c0_i32_0 = arith.constant 0 : i32
    %c0_i32_1 = arith.constant 0 : i32
    return %arg0, %c0_i32, %c0_i32_0 : i32, i32, i32
  }
  func.func @transform_1(%arg0: i32) -> (i32, i32, i32) {
    %c0_i32 = arith.constant 0 : i32
    %c0_i32_0 = arith.constant 0 : i32
    %c0_i32_1 = arith.constant 0 : i32
    return %arg0, %c0_i32, %c0_i32_0 : i32, i32, i32
  }
  func.func @transform_2(%arg0: i32) -> (i32, i32, i32) {
    %c0_i32 = arith.constant 0 : i32
    %c0_i32_0 = arith.constant 0 : i32
    %c0_i32_1 = arith.constant 0 : i32
    return %arg0, %c0_i32, %c0_i32_0 : i32, i32, i32
  }
  func.func @transform_3(%arg0: i32) -> (i32, i32) {
    %c0_i32 = arith.constant 0 : i32
    %c0_i32_0 = arith.constant 0 : i32
    %c0_i32_1 = arith.constant 0 : i32
    return %c0_i32, %c0_i32_0 : i32, i32
  }
  func.func @transform_4(%arg0: i32) -> (i32, i32) {
    %c0_i32 = arith.constant 0 : i32
    %c0_i32_0 = arith.constant 0 : i32
    %c0_i32_1 = arith.constant 0 : i32
    return %c0_i32, %c0_i32_0 : i32, i32
  }
  func.func @transform_5(%arg0: i32) -> (i32, i32, i32) {
    %c0_i32 = arith.constant 0 : i32
    %c0_i32_0 = arith.constant 0 : i32
    %c0_i32_1 = arith.constant 0 : i32
    return %arg0, %c0_i32, %c0_i32_0 : i32, i32, i32
  }
}

</mosaic_0001>

<bundles_post_ra>
// kernel: tpu_custom_call.1
= control target key start
LH: loop header
LB: loop body
LE: loop exit
PB: predicated region body
PF: predicated region fallthrough
CT: control target
= control target key end

     0   :  { %10 = vsyncpa [#allocation3], 0  ;;  %s1394_s0 = inlined_call_operand.hbm [shape: f32[2,16,512], index: 0, kind: input, shape index: {}]   ;;  %s1395_s1 = inlined_call_operand.vmem [shape: f32[2,32,8], index: 1, kind: input, shape index: {}]   ;;  %s1396_s2 = inlined_call_operand.hbm [shape: f32[2,16,512], index: 2, kind: input, shape index: {}]   ;;  %s1397_s3 = inlined_call_operand.vmem [shape: f32[16,8], index: 3, kind: input, shape index: {}]   ;;  %s1398_s4 = inlined_call_operand.vmem [shape: f32[8,128], index: 4, kind: input, shape index: {}]   ;;  %s1399_s5 = inlined_call_operand.hbm [shape: f32[2,16,1536], index: 5, kind: output, shape index: {}]  }
   0x1   :  { %12 = vsyncpa [#allocation3 + $0x1], 0 }
   0x2   :  { %13 = vsyncpa [#allocation6], 0 }
   0x3   :  { %15 = vsyncpa [#allocation6 + $0x1], 0 }
   0x4   :  { %16 = vsyncpa [#allocation4], 0 }
   0x5   :  { %18 = vsyncpa [#allocation4 + $0x1], 0  ;;  %s1101_s18 = smov 0   ;;  %s1103_s19 = smov 0  }
   0x6   :  { %s1105_s20 = smov 0   ;;  %s1107_s21 = smov 0  }
   0x7 LB: > { %s1122_s22 = sadd.s32 4294967295, %s1059_s21   ;;  %s826_s23 = sadd.s32 4294967294, %s1059_s21   ;;  %s1059_s21 = sphi %s1107_s21, %s1417_s21   ;;  %s1055_s20 = sphi %s1105_s20, %s1416_s20   ;;  %s1051_s19 = sphi %s1103_s19, %s1415_s19   ;;  %s1047_s18 = sphi %s1101_s18, %s1414_s18  }
   0x8   : > { %s1126_s24 = sadd.s32 1, %s1059_s21   ;;  %s31_s25 = sadd.s32 1, %s1055_s20 }
   0x9   : > { %s28_s26 = ssub.s32 %s1059_s21, %s1126_s24  ;;  %p38_p0 = scmp.ne.s32.totalorder %s1055_s20, %s1051_s19 }
   0xa   : > { %p29_p1 = scmp.eq.s32.totalorder %s28_s26, 0  ;;  %p39_p2 = scmp.eq.s32.totalorder %s1059_s21, 0 }
   0xb   : > { %p44_p3 = scmp.ne.s32.totalorder %s1051_s19, %s1047_s18  ;;  %p45_p4 = scmp.eq.s32.totalorder %s1122_s22, 0 }
   0xc   : > { %s1138_s27 = scalar_select %p29_p1, %s1055_s20, %s31_s25  }
   0xd   : > { %p1140_p5 = por %p39_p2, %p38_p0  ;;  %p1144_p6 = por %p45_p4, %p44_p3 }
   0xe   : > { %p162_p7 = scmp.eq.s32.totalorder %s1122_s22, 1  ;;  %p168_p8 = scmp.eq.s32.totalorder %s826_s23, 1 }
   0xf   : > { %s1404_s29 = scalar_select %p1144_p6, 1, 0 }
  0x10   : > { %p888_p10 = scmp.lt.s32.totalorder %s1059_s21, 2  ;;  %p1151_p11 = por %p162_p7, %p38_p0 }
  0x11   : > { %p1155_p12 = por %p168_p8, %p44_p3  ;;  %s1160_s7 = sand.u32 1, %s1055_s20  }
  0x12   : > { %s1405_s30 = scalar_select %p1151_p11, 1, 0 }
  0x13   : > { %s1406_s6 = scalar_select %p1155_p12, 1, 0 }
  0x14   : > { %s851_s8 = sshll.u32 %s1059_s21, 10  ;;  %s829_s9 = sshll.u32 %s1160_s7, 6 }
  0x15   : > { %s1169_s12 = scalar_lea.hbm %s1394_s0, %s851_s8  ;;  %s198_s13 = scalar_lea.vmem [#allocation2], %s829_s9 }
  0x16   : > { %s205_s14 = sshll.u32 %s198_s13, 4  ;;  %p1175_p13 = pnand %p888_p10, %p1140_p5  ;;  %s1179_s14 = int_to_ptr.vmem [resolvable:$true] %s205_s14 }
  0x17   : > { %s195_s16 = scalar_lea.sflag [#allocation3], %s1160_s7  ;;  %s929_s17 = scalar_lea.hbm %s1169_s12, 1024 }
  0x18   : > { %p930_p0 = scmp.ne.s32.totalorder %s1169_s12, %s929_s17  ;;  %p931_p1 = pneg %p1175_p13 }
  0x19   : > { %s934_s26 = scalar_lea.hbm %s1394_s0, 2048  ;;  %p935_p4 = scmp.lt.u32.totalorder %s1169_s12, %s1394_s0 }
  0x1a   : > { %p932_p2 = pnand %p931_p1, %p930_p0  ;;  %p936_p5 = scmp.lt.u32.totalorder %s934_s26, %s929_s17 }
  0x1b   : > { %p938_p8 = scmp.lt.u32.totalorder %s929_s17, %s1169_s12 }
  0x1c   : > { %p933_p3 = pneg %p932_p2  ;;  %p937_p7 = por %p936_p5, %p935_p4 }
  0x1e   : > { %p939_p10 = por %p938_p8, %p937_p7 }
  0x20   : > { %p940_p9 = pnand %p939_p10, %p933_p3 }
  0x22   : > { %943 = shalt.err (!%p940_p9)
}
  0x23   : > { %s944_s11 = scalar_lea.vmem %s1179_s14, 1024  ;;  %s1061_s13 = smov [#allocation2]  }
  0x24   : > { %p945_p0 = scmp.ne.s32.totalorder %s1179_s14, %s944_s11  ;;  %s949_s23 = sshll.u32 %s1061_s13, 4  ;;  %s950_s23 = int_to_ptr.vmem [resolvable:$false] %s949_s23 }
  0x25   : > { %s951_s25 = scalar_lea.vmem %s950_s23, 2048  ;;  %p952_p11 = scmp.lt.s32.totalorder %s1179_s14, %s950_s23 }
  0x26   : > { %p947_p2 = pnand %p945_p0, %p931_p1  ;;  %p953_p4 = scmp.lt.s32.totalorder %s951_s25, %s944_s11 }
  0x28   : > { %p948_p12 = pneg %p947_p2  ;;  %p954_p5 = por %p953_p4, %p952_p11 }
  0x2a   : > { %p955_p7 = pnand %p954_p5, %p948_p12 }
  0x2c   : > { %958 = shalt.err (!%p955_p7)
}
  0x2d   : > { %s1401_s17 = smov 512   ;;  %s1063_s26 = smov 32  }
  0x2e   : > { %880 = dma.hbm_to_vmem [thread:$0]  (!%p1175_p13), %s1169_s12, 1024, %s1179_s14, %s195_s16, %s1401_s17, %s1401_s17, %s1063_s26  }
  0x2f   : > { %p835_p9 = scmp.ge.s32.totalorder %s1059_s21, 1  ;;  %p242_p11 = scmp.lt.s32.totalorder %s1059_s21, 3 }
  0x30   : > { %s1223_s13 = scalar_lea.hbm %s1396_s2, %s851_s8  ;;  %s227_s23 = scalar_lea.vmem [#allocation5], %s829_s9 }
  0x31   : > { %p1214_p12 = pnand %p835_p9, %p242_p11  ;;  %s234_s25 = sshll.u32 %s227_s23, 4  ;;  %s1227_s25 = int_to_ptr.vmem [resolvable:$true] %s234_s25 }
  0x32   : > { %s224_s12 = scalar_lea.sflag [#allocation6], %s1160_s7  ;;  %s959_s14 = scalar_lea.hbm %s1223_s13, 1024 }
  0x33   : > { %p960_p3 = scmp.ne.s32.totalorder %s1223_s13, %s959_s14  ;;  %s964_s8 = scalar_lea.hbm %s1396_s2, 2048 }
  0x34   : > { %p965_p0 = scmp.lt.u32.totalorder %s1223_s13, %s1396_s2  ;;  %p966_p2 = scmp.lt.u32.totalorder %s964_s8, %s959_s14 }
  0x35   : > { %p962_p8 = pnand %p960_p3, %p931_p1  ;;  %p968_p5 = scmp.lt.u32.totalorder %s959_s14, %s1223_s13 }
  0x36   : > { %p967_p4 = por %p966_p2, %p965_p0 }
  0x37   : > { %p963_p10 = pneg %p962_p8 }
  0x38   : > { %p969_p7 = por %p968_p5, %p967_p4 }
  0x3a   : > { %p970_p9 = pnand %p969_p7, %p963_p10 }
  0x3c   : > { %973 = shalt.err (!%p970_p9)
}
  0x3d   : > { %s974_s9 = scalar_lea.vmem %s1227_s25, 1024  ;;  %s1064_s23 = smov [#allocation5]  }
  0x3e   : > { %p975_p11 = scmp.ne.s32.totalorder %s1227_s25, %s974_s9  ;;  %s979_s16 = sshll.u32 %s1064_s23, 4  ;;  %s980_s16 = int_to_ptr.vmem [resolvable:$false] %s979_s16 }
  0x3f   : > { %s981_s17 = scalar_lea.vmem %s980_s16, 2048  ;;  %p982_p6 = scmp.lt.s32.totalorder %s1227_s25, %s980_s16 }
  0x40   : > { %p977_p3 = pnand %p975_p11, %p931_p1  ;;  %p983_p0 = scmp.lt.s32.totalorder %s981_s17, %s974_s9 }
  0x42   : > { %p978_p8 = pneg %p977_p3  ;;  %p984_p2 = por %p983_p0, %p982_p6 }
  0x44   : > { %p985_p4 = pnand %p984_p2, %p978_p8 }
  0x46   : > { %988 = shalt.err (!%p985_p4)
}
  0x47   : > { %s1409_s14 = smov 512   ;;  %246 = sbr.rel (%p1214_p12) target bundleno = 546 (0x222), region = 40 }
  0x48   : > { %883 = dma.hbm_to_vmem [thread:$0]  (!%p1175_p13), %s1223_s13, 1024, %s1227_s25, %s224_s12, %s1409_s14, %s1409_s14, %s1063_s26  }
  0x49   : > { %s1261_s10 = sand.u32 (!%p1214_p12), 1, %s1051_s19   ;;  %p1410_p6 = scmp.ne.s32.totalorder (!%p1214_p12), %s1404_s29, 0 }
  0x4a   : > { %s836_s8 = sshll.u32 (!%p1214_p12), %s1261_s10, 6  ;;  %s249_s11 = scalar_lea.sflag (!%p1214_p12), [#allocation3], %s1261_s10 }
  0x4b   : > { %s1265_s15 = scalar_lea.vmem (!%p1214_p12), [#allocation2], %s836_s8 }
  0x4e   : > { %1034 = dma.done.wait (%p1410_p6), %s249_s11, 1024  }
  0x4f   : > { %1036 = vsyncadd (%p1410_p6), %s249_s11, 4294966272  ;;  %s258_s7 = scalar_lea.sflag [#allocation6], %s1261_s10  ;;  %s1272_s26 = scalar_lea.vmem [#allocation5], %s836_s8 }
  0x50   : > { %1038 = dma.done.wait (%p1410_p6), %s258_s7, 1024  }
  0x51   : > { %1040 = vsyncadd (%p1410_p6), %s258_s7, 4294966272  ;;  %p298_p13 = scmp.lt.s32.totalorder %s1122_s22, 1  ;;  %v333_v0 = vld [vmem:[%s1398_s4] sm:$0xff]  ;;  %vm334_vm0 = vcmask 64512   ;;  %v1065_v5 = vmov 0.0   ;;  %v435_v8 = vlaneseq  ;;  %v332_v37 = vld [vmem:[%s1397_s3 + $0x8] sm:$0xff] }
  0x52   : > { %859 = vmatprep.subr.mxu0 %v333_v0  ;;  %867 = vmatprep.subr.mxu1 %v333_v0  ;;  %v1066_v6 = vmov 1935823168   ;;  %v1067_v11 = vmov 1983009808   ;;  %v331_v36 = vld [vmem:[%s1397_s3] sm:$0xff]  ;;  %s869_s11 = smul.u32 192, %s1261_s10 }
  0x53   : > { %s299_s28 = scalar_select %p298_p13, %s1122_s22, 1  ;;  %860 = vmatpush3.msra.mxu0 %v333_v0  ;;  %868 = vmatpush3.msra.mxu1 %v333_v0  ;;  %v433_v7 = vunpack.c.l.s4 %v1066_v6  ;;  %v436_v10 = vshrl.u32 %v435_v8, 7  ;;  %v469_v12 = vunpack.c.l.s4 %v1067_v11  ;;  %v303_v38 = vld [vmem:[%s1265_s15] sm:$0xff]  ;;  %v304_v39 = vld [vmem:[%s1265_s15 + $0x8] sm:$0xff]  ;;  %v305_v40 = vld [vmem:[%s1265_s15 + $0x10] sm:$0xff] }
  0x54   : > { %v306_v41 = vld [vmem:[%s1265_s15 + $0x18] sm:$0xff]  ;;  %v307_v42 = vld [vmem:[%s1265_s15 + $0x20] sm:$0xff]  ;;  %v308_v43 = vld [vmem:[%s1265_s15 + $0x28] sm:$0xff]  ;;  %v311_v44 = vmax.f32 %v303_v38, 0.0  ;;  %v312_v45 = vmax.f32 %v304_v39, 0.0  ;;  %v313_v46 = vmax.f32 %v305_v40, 0.0 }
  0x55   : > { %s853_s13 = sshll.u32 %s299_s28, 5  ;;  %v434_v9 = vunpack.c.0.s8 %v433_v7  ;;  %v470_v14 = vunpack.c.0.s8 %v469_v12  ;;  %v309_v47 = vld [vmem:[%s1265_s15 + $0x30] sm:$0xff]  ;;  %v310_v48 = vld [vmem:[%s1265_s15 + $0x38] sm:$0xff]  ;;  %v314_v49 = vmax.f32 %v306_v41, 0.0  ;;  %v315_v50 = vmax.f32 %v307_v42, 0.0  ;;  %v680_v52 = vld [vmem:[%s1272_s26] sm:$0xff] }
  0x56   : > { %s302_s9 = scalar_lea.vmem %s1395_s1, %s853_s13  ;;  %v316_v51 = vmax.f32 %v308_v43, 0.0  ;;  %v317_v53 = vmax.f32 %v309_v47, 0.0  ;;  %v318_v54 = vmax.f32 %v310_v48, 0.0  ;;  %s1310_s7 = scalar_lea.vmem [#allocation7], %s869_s11  ;;  %v681_v55 = vld [vmem:[%s1272_s26 + $0x8] sm:$0xff]  ;;  %v682_v56 = vld [vmem:[%s1272_s26 + $0x10] sm:$0xff] }
  0x57   : > { %v327_v1 = vld [vmem:[%s302_s9] sm:$0xff]  ;;  %v329_v2 = vld [vmem:[%s302_s9 + $0x10] sm:$0xff]  ;;  %v328_v3 = vld [vmem:[%s302_s9 + $0x8] sm:$0xff]  ;;  %v437_v13 = vsub.s32 %v434_v9, %v436_v10  ;;  %v473_v22 = vsub.s32 %v470_v14, %v436_v10  ;;  %319 = vst [vmem:[%s1310_s7] sm:$0xff] %v311_v44  ;;  %v688_v58 = vmax.f32 %v680_v52, 0.0  ;;  %v689_v62 = vmax.f32 %v681_v55, 0.0  ;;  %s870_s15 = smul.u32 3072, %s1122_s22 }
  0x58   : > { %v330_v4 = vld [vmem:[%s302_s9 + $0x18] sm:$0xff]  ;;  %861 = vmatprep.mubr.msk.f32.mxu0 %vm334_vm0, %v327_v1  ;;  %864 = vmatprep.mubr.msk.f32.mxu1 %vm334_vm0, %v329_v2  ;;  %320 = vst [vmem:[%s1310_s7 + $0x8] sm:$0xff] %v312_v45  ;;  %321 = vst [vmem:[%s1310_s7 + $0x10] sm:$0xff] %v313_v46  ;;  %v684_v59 = vld [vmem:[%s1272_s26 + $0x20] sm:$0xff]  ;;  %v690_v63 = vmax.f32 %v682_v56, 0.0  ;;  %s705_s25 = scalar_lea.sflag [#allocation4], %s1261_s10 }
  0x59   : > { %862 = vmatmul.mubr.msk.f32.vlgmr.msra.gmra.mrb[0].mxu0 %vm334_vm0, %v328_v3  ;;  %865 = vmatmul.mubr.msk.f32.vlgmr.msra.gmra.mrb[0].mxu1 %vm334_vm0, %v330_v4  ;;  %v683_v57 = vld [vmem:[%s1272_s26 + $0x18] sm:$0xff]  ;;  %322 = vst [vmem:[%s1310_s7 + $0x18] sm:$0xff] %v314_v49  ;;  %323 = vst [vmem:[%s1310_s7 + $0x60] sm:$0xff] %v315_v50  ;;  %v685_v60 = vld [vmem:[%s1272_s26 + $0x28] sm:$0xff]  ;;  %v692_v2 = vmax.f32 %v684_v59, 0.0  ;;  %s1344_s13 = scalar_lea.hbm %s1399_s5, %s870_s15  ;;  %p1411_p12 = scmp.ne.s32.totalorder %s1405_s30, 0 }
  0x5a   : > { %574 = vmatprep.mubr.f32.mxu1 %v1065_v5  ;;  %651 = vmatprep.mubr.f32.mxu0 %v1065_v5  ;;  %324 = vst [vmem:[%s1310_s7 + $0x68] sm:$0xff] %v316_v51  ;;  %v686_v61 = vld [vmem:[%s1272_s26 + $0x30] sm:$0xff]  ;;  %v691_v0 = vmax.f32 %v683_v57, 0.0  ;;  %325 = vst [vmem:[%s1310_s7 + $0x70] sm:$0xff] %v317_v53  ;;  %v687_v1 = vld [vmem:[%s1272_s26 + $0x38] sm:$0xff]  ;;  %v693_v3 = vmax.f32 %v685_v60, 0.0 }
  0x5b   : > { %326 = vst [vmem:[%s1310_s7 + $0x78] sm:$0xff] %v318_v54  ;;  %v694_v4 = vmax.f32 %v686_v61, 0.0  ;;  %696 = vst [vmem:[%s1310_s7 + $0x40] sm:$0xff] %v688_v58  ;;  %s718_s26 = sshll.u32 %s1310_s7, 4  ;;  %s1068_s9 = smov [#allocation7]   ;;  %s1346_s26 = int_to_ptr.vmem [resolvable:$true] %s718_s26 }
  0x5c   : > { %697 = vst [vmem:[%s1310_s7 + $0x48] sm:$0xff] %v689_v62  ;;  %698 = vst [vmem:[%s1310_s7 + $0x50] sm:$0xff] %v690_v63  ;;  %s989_s12 = scalar_lea.vmem %s1346_s26, 3072  ;;  %s993_s23 = sshll.u32 %s1068_s9, 4  ;;  %s994_s23 = int_to_ptr.vmem [resolvable:$false] %s993_s23 }
  0x5d   : > { %699 = vst [vmem:[%s1310_s7 + $0x58] sm:$0xff] %v691_v0  ;;  %700 = vst [vmem:[%s1310_s7 + $0xa0] sm:$0xff] %v692_v2  ;;  %p990_p1 = scmp.ne.s32.totalorder %s1346_s26, %s989_s12  ;;  %s995_s16 = scalar_lea.vmem %s994_s23, 6144 }
  0x5e   : > { %701 = vst [vmem:[%s1310_s7 + $0xa8] sm:$0xff] %v693_v3  ;;  %702 = vst [vmem:[%s1310_s7 + $0xb0] sm:$0xff] %v694_v4  ;;  %p996_p7 = scmp.lt.s32.totalorder %s1346_s26, %s994_s23  ;;  %p997_p9 = scmp.lt.s32.totalorder %s995_s16, %s989_s12 }
  0x5f   : > { %p991_p10 = pnand %p990_p1, %p1411_p12 }
  0x60   : > { %p998_p11 = por %p997_p9, %p996_p7 }
  0x61   : > { %p992_p5 = pneg %p991_p10 }
  0x63   : > { %p999_p3 = pnand %p998_p11, %p992_p5 }
 0x12c   : > { %v863_v15 = vpop.f32.mrb[0].mxu0  ;;  %v866_v16 = vpop.f32.mrb[0].mxu1 }
 0x12d   : > { %v445_v17 = vrot.slane %v863_v15, %v437_v13  ;;  %v459_v18 = vrot.slane %v866_v16, %v437_v13  ;;  %v413_v19 = vpop.f32.mrb[1].mxu0  ;;  %v423_v20 = vpop.f32.mrb[1].mxu1 }
 0x12e   : > { %v438_v21 = vrot.slane %v413_v19, %v437_v13  ;;  %v452_v23 = vrot.slane %v423_v20, %v437_v13 }
 0x130   : > { %v464_v24 = vcombine.low %v438_v21, %v445_v17  ;;  %v465_v25 = vcombine.high %v438_v21, %v445_v17  ;;  %v466_v26 = vcombine.low %v452_v23, %v459_v18  ;;  %v467_v27 = vcombine.high %v452_v23, %v459_v18 }
 0x132   : > { %v474_v28 = vrot.slane %v464_v24, %v473_v22  ;;  %v481_v29 = vrot.slane %v465_v25, %v473_v22  ;;  %v488_v30 = vrot.slane %v466_v26, %v473_v22  ;;  %v495_v31 = vrot.slane %v467_v27, %v473_v22 }
 0x134   : > { %v496_v32 = vcombine.low %v474_v28, %v488_v30  ;;  %v498_v33 = vcombine.low %v481_v29, %v495_v31  ;;  %v497_v34 = vcombine.high %v474_v28, %v488_v30  ;;  %v499_v35 = vcombine.high %v481_v29, %v495_v31 }
 0x136   : > { %510 = vmatprep.subr.mxu1 %v497_v34  ;;  %587 = vmatprep.subr.mxu0 %v499_v35 }
 0x137   : > { %511 = vmatpush1.msra.mxu1 %v496_v32  ;;  %588 = vmatpush1.msra.mxu0 %v498_v33 }
 0x138   : > { %844 = vmatmul.mubr.msk.f32.vlgmr.msra.gmra.mrb[2].mxu1 %vm334_vm0, %v331_v36  ;;  %846 = vmatmul.mubr.msk.f32.vlgmr.msra.gmra.mrb[2].mxu0 %vm334_vm0, %v331_v36 }
 0x139   : > { %580 = vmatprep.mubr.f32.mxu1 %v1065_v5  ;;  %657 = vmatprep.mubr.f32.mxu0 %v1065_v5  ;;  %v695_v5 = vmax.f32 %v687_v1, 0.0 }
 0x13b   : > { %703 = vst [vmem:[%s1310_s7 + $0xb8] sm:$0xff] %v695_v5 }
 0x13c   : > { %845 = vmatmul.mubr.msk.f32.gmra.mrb[4].mxu1 %vm334_vm0, %v332_v37  ;;  %847 = vmatmul.mubr.msk.f32.gmra.mrb[4].mxu0 %vm334_vm0, %v332_v37 }
 0x20b   : > { %v576_v6 = vpop.f32.mrb[2].mxu1  ;;  %v653_v7 = vpop.f32.mrb[2].mxu0 }
 0x20c   : > { %v664_v8 = vmax.f32 %v576_v6, 0.0  ;;  %v666_v9 = vmax.f32 %v653_v7, 0.0  ;;  %v578_v10 = vpop.f32.mrb[3].mxu1  ;;  %v655_v11 = vpop.f32.mrb[3].mxu0 }
 0x20d   : > { %v665_v12 = vmax.f32 %v578_v10, 0.0  ;;  %v667_v13 = vmax.f32 %v655_v11, 0.0 }
 0x20e   : > { %672 = vst [vmem:[%s1310_s7 + $0x20] sm:$0xff] %v664_v8  ;;  %674 = vst [vmem:[%s1310_s7 + $0x30] sm:$0xff] %v666_v9 }
 0x20f   : > { %673 = vst [vmem:[%s1310_s7 + $0x28] sm:$0xff] %v665_v12  ;;  %675 = vst [vmem:[%s1310_s7 + $0x38] sm:$0xff] %v667_v13  ;;  %v582_v14 = vpop.f32.mrb[4].mxu1  ;;  %v659_v15 = vpop.f32.mrb[4].mxu0 }
 0x210   : > { %v668_v16 = vmax.f32 %v582_v14, 0.0  ;;  %v670_v17 = vmax.f32 %v659_v15, 0.0  ;;  %v584_v18 = vpop.f32.mrb[5].mxu1  ;;  %v661_v19 = vpop.f32.mrb[5].mxu0 }
 0x211   : > { %v669_v20 = vmax.f32 %v584_v18, 0.0  ;;  %v671_v21 = vmax.f32 %v661_v19, 0.0 }
 0x212   : > { %676 = vst [vmem:[%s1310_s7 + $0x80] sm:$0xff] %v668_v16  ;;  %678 = vst [vmem:[%s1310_s7 + $0x90] sm:$0xff] %v670_v17 }
 0x213   : > { %677 = vst [vmem:[%s1310_s7 + $0x88] sm:$0xff] %v669_v20  ;;  %679 = vst [vmem:[%s1310_s7 + $0x98] sm:$0xff] %v671_v21 }
 0x214   : > { %1002 = shalt.err (!%p999_p3)
}
 0x215   : > { %s1003_s29 = scalar_lea.hbm %s1344_s13, 3072  ;;  %s1007_s8 = scalar_lea.hbm %s1399_s5, 6144 }
 0x216   : > { %p1004_p8 = scmp.ne.s32.totalorder %s1344_s13, %s1003_s29  ;;  %p1008_p4 = scmp.lt.u32.totalorder %s1344_s13, %s1399_s5 }
 0x217   : > { %p1009_p6 = scmp.lt.u32.totalorder %s1007_s8, %s1003_s29  ;;  %p1011_p1 = scmp.lt.u32.totalorder %s1003_s29, %s1344_s13 }
 0x218   : > { %p1005_p0 = pnand %p1004_p8, %p1411_p12 }
 0x219   : > { %p1010_p13 = por %p1009_p6, %p1008_p4 }
 0x21a   : > { %p1006_p2 = pneg %p1005_p0 }
 0x21b   : > { %p1012_p10 = por %p1011_p1, %p1010_p13 }
 0x21d   : > { %p1013_p5 = pnand %p1012_p10, %p1006_p2 }
 0x21f   : > { %1016 = shalt.err (!%p1013_p5)
}
 0x220   : > { %s1069_s15 = smov 1536   ;;  %s1070_s22 = smov 96  }
 0x221   : > { %875 = dma.vmem_to_hbm [thread:$0]  (%p1411_p12), %s1346_s26, 3072, %s1344_s13, %s705_s25, %s1069_s15, %s1069_s15, %s1070_s22  }
 0x222 PF: > { %s733_s28 = sand.u32 1, %s1047_s18   ;;  %p1412_p7 = scmp.ne.s32.totalorder %s1406_s6, 0 }
 0x223   : > { %p1413_p9 = scmp.ge.s32.totalorder %s1059_s21, 2  ;;  %s734_s12 = scalar_lea.sflag [#allocation4], %s733_s28 }
 0x225   : > { %p885_p11 = pnand %p1413_p9, %p1412_p7 }
 0x227   : > { %1042 = dma.done.wait (!%p885_p11), %s734_s12, 3072  }
 0x228   : > { %1044 = vsyncadd (!%p885_p11), %s734_s12, 4294964224  ;;  %p21_p3 = scmp.ge.s32.totalorder %s1126_s24, 4   ;;  %s1414_s18 = smov %s1051_s19 }
 0x229   : > { %s1415_s19 = smov %s1055_s20  ;;  %s1416_s20 = smov %s1138_s27 }
 0x22a   : > { %s1417_s21 = smov %s1126_s24  ;;  %23 = sbr.rel (!%p21_p3) target bundleno = 7 (0x7), region = 101 }
 0x231   :  { %739 = vsyncpa [#allocation3], 1 }
 0x232   :  { %741 = vsyncpa [#allocation3 + $0x1], 1 }
 0x233   :  { %742 = vsyncpa [#allocation6], 1 }
 0x234   :  { %744 = vsyncpa [#allocation6 + $0x1], 1 }
 0x235   :  { %745 = vsyncpa [#allocation4], 1 }
 0x236   :  { %747 = vsyncpa [#allocation4 + $0x1], 1 }

</bundles_post_ra>
